<compile_context>
chip_gen: v6e
topology: v6e:2x2x1
jax: 0.10.0
libtpu: 0.0.40
codegen_flags: <defaults>
</compile_context>

<pallas_src>
import math

import jax
import jax.numpy as jnp
from jax import lax
from jax.experimental import pallas as pl
from jax.experimental.pallas import tpu as pltpu

_SCALE = math.sqrt(0.5)


# ----------------------------------------------------------------------------
# Pallas kernel (i == 1 path only)
# ----------------------------------------------------------------------------
def _residual_linear_kernel(x_ref, res_ref, v_ref, scale_ref, b_ref, o_ref):
    """o = x * sqrt(0.5) + (res @ v.T) * scale + b_scaled.

    scale = g / ||v||_row * sqrt(0.5)  (precomputed, shape (1, H), lane-dense)
    b_scaled = b * sqrt(0.5)           (precomputed, shape (1, H))
    """
    # out[n, h] = sum_e res[n, e] * v[h, e]  -> contract last axes, no transpose materialized.
    proj = lax.dot_general(
        res_ref[...], v_ref[...], (((1,), (1,)), ((), ())),
        preferred_element_type=jnp.float32,
    )                                                                # (N, H)
    o_ref[...] = x_ref[...] * _SCALE + proj * scale_ref[...] + b_ref[...]


# ----------------------------------------------------------------------------
# Wrapper
# ----------------------------------------------------------------------------
def prepare_params(params):
    """Hoisted, parameter-only weight-norm math (done once in XLA, not per kernel call)."""
    v, g, b = params["v"], params["g"], params["b"]                  # (H, E), (1, H), (1, H)
    inv_norm = lax.rsqrt(jnp.sum(v * v, axis=1))                     # (H,)  exact rsqrt
    scale = g * inv_norm[None, :] * _SCALE                           # (1, H)
    b_scaled = b * _SCALE                                            # (1, H)
    return dict(v=v, scale=scale, b_scaled=b_scaled)


def residual_forward(x, res, i, prepped):
    """x: (B, S, H); res: (B, S, E) if i == 1 else (B, S, H)."""
    B, S, H = x.shape

    if i != 1:
        # Tiny elementwise op: let XLA fuse it; a Pallas dispatch is pure overhead here.
        return (x + res) * _SCALE

    E = res.shape[-1]
    xf = x.reshape(B * S, H)
    rf = res.reshape(B * S, E)
    vmem = pl.BlockSpec(memory_space=pltpu.MemorySpace.VMEM)

    out = pl.pallas_call(
        _residual_linear_kernel,
        out_shape=jax.ShapeDtypeStruct((B * S, H), jnp.float32),
        in_specs=[vmem] * 5,
        out_specs=vmem,
    )(xf, rf, prepped["v"], prepped["scale"], prepped["b_scaled"])
    return out.reshape(B, S, H)


# ----------------------------------------------------------------------------
# Pure-JAX reference (mirrors the PyTorch module exactly)
# ----------------------------------------------------------------------------
def reference_forward(x, res, i, params):
    if i == 1:
        v, g, b = params["v"], params["g"], params["b"]
        # weight_norm(dim=0): W = g * v / ||v||_row  with g as a per-row scalar.
        w = v * (g.reshape(-1, 1) / jnp.sqrt(jnp.sum(v * v, axis=1, keepdims=True)))
        res = res @ w.T + b
    return (x + res) * math.sqrt(0.5)


# ----------------------------------------------------------------------------
# Deterministic parameter construction
# ----------------------------------------------------------------------------
def init_params(key, embedding_dim, hidden_size):
    kv, kg, kb = jax.random.split(key, 3)
    # nn.init.normal_(weight, std=sqrt(1/in_features)); weight_norm splits it into (v, g).
    v = jax.random.normal(kv, (hidden_size, embedding_dim), jnp.float32) * (1.0 / embedding_dim) ** 0.5
    g = jnp.sqrt(jnp.sum(v * v, axis=1))[None, :]                    # (1, H) lane-dense
    g = g * (1.0 + 0.05 * jax.random.normal(kg, g.shape, jnp.float32))  # perturb so g != ||v||
    b = jax.random.normal(kb, (1, hidden_size), jnp.float32) * 0.01     # bias (zeros in torch init)
    return dict(v=v, g=g, b=b)


if __name__ == "__main__":
    B, S = 2, 8
    embedding_dim, hidden_size = 64, 128

    key = jax.random.PRNGKey(0)
    kp, kx, kr1, kr2 = jax.random.split(key, 4)
    params = init_params(kp, embedding_dim, hidden_size)
    prepped = prepare_params(params)

    x = jax.random.normal(kx, (B, S, hidden_size), jnp.float32)
    res_embed = jax.random.normal(kr1, (B, S, embedding_dim), jnp.float32)   # i == 1 input
    res_hidden = jax.random.normal(kr2, (B, S, hidden_size), jnp.float32)    # i != 1 input

    # i == 1 path: weight-normalized linear + residual + scale (Pallas kernel)
    out1 = residual_forward(x, res_embed, 1, prepped)
    # i != 1 path: plain residual + scale (pure XLA, no kernel)
    out2 = residual_forward(x, res_hidden, 2, prepped)
    jax.block_until_ready((out1, out2))

    ref1 = reference_forward(x, res_embed, 1, params)
    ref2 = reference_forward(x, res_hidden, 2, params)

    assert jnp.allclose(out1, ref1, atol=1e-5, rtol=1e-5), "i==1 path mismatch"
    assert jnp.allclose(out2, ref2, atol=1e-6, rtol=1e-6), "i!=1 path mismatch"
    print("KERNEL_OK")
</pallas_src>

<mosaic_0001>
module attributes {stable_mosaic.version = 11 : i64} {
  func.func @_residual_linear_kernel(%arg0: memref<16x128xf32, #tpu.memory_space<vmem>>, %arg1: memref<16x64xf32, #tpu.memory_space<vmem>>, %arg2: memref<128x64xf32, #tpu.memory_space<vmem>>, %arg3: memref<1x128xf32, #tpu.memory_space<vmem>>, %arg4: memref<1x128xf32, #tpu.memory_space<vmem>>, %arg5: memref<16x128xf32, #tpu.memory_space<vmem>>) attributes {dimension_semantics = [], scalar_prefetch = 0 : i64, scratch_operands = 0 : i64, tpu.core_type = #tpu.core_type<tc>} {
    %c0 = arith.constant 0 : index
    %c0_0 = arith.constant 0 : index
    %0 = vector.load %arg1[%c0, %c0_0] : memref<16x64xf32, #tpu.memory_space<vmem>>, vector<16x64xf32>
    %c0_1 = arith.constant 0 : index
    %c0_2 = arith.constant 0 : index
    %1 = vector.load %arg2[%c0_1, %c0_2] : memref<128x64xf32, #tpu.memory_space<vmem>>, vector<128x64xf32>
    %cst = arith.constant dense<0.000000e+00> : vector<16x128xf32>
    %2 = tpu.matmul %0, %1, %cst {dimension_numbers = #tpu.dot_dimension_numbers<[1], [1], [0], [0], [0, 0, 1, 0], [], []>} : vector<16x64xf32>, vector<128x64xf32>, vector<16x128xf32> -> vector<16x128xf32>
    %c0_3 = arith.constant 0 : index
    %c0_4 = arith.constant 0 : index
    %3 = vector.load %arg0[%c0_3, %c0_4] : memref<16x128xf32, #tpu.memory_space<vmem>>, vector<16x128xf32>
    %cst_5 = arith.constant 0.707106769 : f32
    %4 = vector.broadcast %cst_5 : f32 to vector<16x128xf32>
    %5 = arith.mulf %3, %4 : vector<16x128xf32>
    %c0_6 = arith.constant 0 : index
    %c0_7 = arith.constant 0 : index
    %6 = vector.load %arg3[%c0_6, %c0_7] : memref<1x128xf32, #tpu.memory_space<vmem>>, vector<1x128xf32>
    %7 = vector.broadcast %6 : vector<1x128xf32> to vector<16x128xf32>
    %8 = arith.mulf %2, %7 : vector<16x128xf32>
    %9 = arith.addf %5, %8 : vector<16x128xf32>
    %c0_8 = arith.constant 0 : index
    %c0_9 = arith.constant 0 : index
    %10 = vector.load %arg4[%c0_8, %c0_9] : memref<1x128xf32, #tpu.memory_space<vmem>>, vector<1x128xf32>
    %11 = vector.broadcast %10 : vector<1x128xf32> to vector<16x128xf32>
    %12 = arith.addf %9, %11 : vector<16x128xf32>
    %c0_10 = arith.constant 0 : index
    %c0_11 = arith.constant 0 : index
    %13 = vector.load %arg5[%c0_10, %c0_11] : memref<16x128xf32, #tpu.memory_space<vmem>>, vector<16x128xf32>
    tpu.vector_store %arg5[%c0_10, %c0_11], %12 {strides = array<i32>} : memref<16x128xf32, #tpu.memory_space<vmem>>, vector<16x128xf32>,
    return
  }
}

</mosaic_0001>

<bundles_post_ra>
// kernel: tpu_custom_call.1
= control target key start
LH: loop header
LB: loop body
LE: loop exit
PB: predicated region body
PF: predicated region fallthrough
CT: control target
= control target key end

     0   :  { %vm39_vm0 = vcmask 523264   ;;  %s445_s0 = inlined_call_operand.vmem [shape: f32[16,128], index: 0, kind: input, shape index: {}]   ;;  %s446_s1 = inlined_call_operand.vmem [shape: f32[16,64], index: 1, kind: input, shape index: {}]   ;;  %s447_s2 = inlined_call_operand.vmem [shape: f32[128,64], index: 2, kind: input, shape index: {}]   ;;  %s448_s3 = inlined_call_operand.vmem [shape: f32[1,128], index: 3, kind: input, shape index: {}]   ;;  %s449_s4 = inlined_call_operand.vmem [shape: f32[1,128], index: 4, kind: input, shape index: {}]   ;;  %s450_s5 = inlined_call_operand.hbm [shape: f32[16,128], index: 5, kind: output, shape index: {}]  }
   0x1   :  { %v38_v0 = vld [vmem:[%s447_s2 + $0x78] sm:$0xff]  ;;  %v37_v1 = vld [vmem:[%s447_s2 + $0x70] sm:$0xff]  ;;  %v36_v2 = vld [vmem:[%s447_s2 + $0x68] sm:$0xff] }
   0x2   :  { %249 = vmatprep.subr.msk.mxu0 %vm39_vm0, %v38_v0  ;;  %v21_v3 = vld [vmem:[%s446_s1] sm:$0xff] }
   0x3   :  { %250 = vmatpush3.xpose.msk.msra.mxu0 %vm39_vm0, %v38_v0  ;;  %281 = vmatprep.mubr.msk.f32.mxu0 %vm39_vm0, %v21_v3 }
   0x4   :  { %251 = vmatprep.subr.msk.mxu0 %vm39_vm0, %v37_v1 }
   0x7   :  { %252 = vmatpush3.xpose.msk.msra.mxu0 %vm39_vm0, %v37_v1 }
   0x8   :  { %10 = vsyncpa [#allocation3], 0  ;;  %253 = vmatprep.subr.msk.mxu0 %vm39_vm0, %v36_v2  ;;  %v35_v4 = vld [vmem:[%s447_s2 + $0x60] sm:$0xff]  ;;  %v34_v5 = vld [vmem:[%s447_s2 + $0x58] sm:$0xff]  ;;  %s309_s10 = smov [#allocation2]  }
   0x9   :  { %v33_v6 = vld [vmem:[%s447_s2 + $0x50] sm:$0xff]  ;;  %v32_v7 = vld [vmem:[%s447_s2 + $0x48] sm:$0xff]  ;;  %v31_v8 = vld [vmem:[%s447_s2 + $0x40] sm:$0xff]  ;;  %s200_s11 = sshll.u32 %s309_s10, 4  ;;  %s201_s11 = int_to_ptr.vmem [resolvable:$true] %s200_s11 }
   0xa   :  { %v30_v9 = vld [vmem:[%s447_s2 + $0x38] sm:$0xff]  ;;  %v29_v10 = vld [vmem:[%s447_s2 + $0x30] sm:$0xff]  ;;  %v28_v11 = vld [vmem:[%s447_s2 + $0x28] sm:$0xff]  ;;  %p292_p1 = scmp.lt.s32.totalorder %s201_s11, %s201_s11 }
   0xb   :  { %254 = vmatpush3.xpose.msk.msra.mxu0 %vm39_vm0, %v36_v2  ;;  %v27_v12 = vld [vmem:[%s447_s2 + $0x20] sm:$0xff]  ;;  %v26_v13 = vld [vmem:[%s447_s2 + $0x18] sm:$0xff]  ;;  %v25_v14 = vld [vmem:[%s447_s2 + $0x10] sm:$0xff] }
   0xc   :  { %255 = vmatprep.subr.msk.mxu0 %vm39_vm0, %v35_v4  ;;  %v24_v15 = vld [vmem:[%s447_s2 + $0x8] sm:$0xff]  ;;  %v23_v16 = vld [vmem:[%s447_s2] sm:$0xff] }
   0xd   :  { %v22_v17 = vld [vmem:[%s446_s1 + $0x8] sm:$0xff]  ;;  %v229_v19 = vld [vmem:[%s448_s3] ss:$0 sm:$0xff] }
   0xe   :  { %v170_v18 = vld [vmem:[%s445_s0 + $0x8] sm:$0xff]  ;;  %v169_v20 = vld [vmem:[%s445_s0] sm:$0xff]  ;;  %s287_s0 = scalar_lea.vmem %s201_s11, 256 }
   0xf   :  { %256 = vmatpush3.xpose.msk.msra.mxu0 %vm39_vm0, %v35_v4  ;;  %v172_v21 = vmul.f32 0.70710677, %v170_v18  ;;  %v171_v24 = vmul.f32 0.70710677, %v169_v20  ;;  %v230_v25 = vld [vmem:[%s449_s4] ss:$0 sm:$0xff]  ;;  %p288_p0 = scmp.ne.s32.totalorder %s201_s11, %s287_s0  ;;  %p293_p2 = scmp.lt.s32.totalorder %s287_s0, %s287_s0 }
  0x10   :  { %257 = vmatprep.subr.msk.mxu0 %vm39_vm0, %v34_v5 }
  0x11   :  { %p294_p3 = por %p293_p2, %p292_p1 }
  0x13   :  { %258 = vmatpush3.xpose.msk.msra.mxu0 %vm39_vm0, %v34_v5  ;;  %p295_p4 = pnand %p294_p3, %p288_p0 }
  0x14   :  { %259 = vmatprep.subr.msk.mxu0 %vm39_vm0, %v33_v6 }
  0x17   :  { %260 = vmatpush3.xpose.msk.msra.mxu0 %vm39_vm0, %v33_v6 }
  0x18   :  { %261 = vmatprep.subr.msk.mxu0 %vm39_vm0, %v32_v7 }
  0x1b   :  { %262 = vmatpush3.xpose.msk.msra.mxu0 %vm39_vm0, %v32_v7 }
  0x1c   :  { %263 = vmatprep.subr.msk.mxu0 %vm39_vm0, %v31_v8 }
  0x1f   :  { %264 = vmatpush3.xpose.msk.msra.mxu0 %vm39_vm0, %v31_v8 }
  0x20   :  { %265 = vmatprep.subr.msk.mxu0 %vm39_vm0, %v30_v9 }
  0x23   :  { %266 = vmatpush3.xpose.msk.msra.mxu0 %vm39_vm0, %v30_v9 }
  0x24   :  { %267 = vmatprep.subr.msk.mxu0 %vm39_vm0, %v29_v10 }
  0x27   :  { %268 = vmatpush3.xpose.msk.msra.mxu0 %vm39_vm0, %v29_v10 }
  0x28   :  { %269 = vmatprep.subr.msk.mxu0 %vm39_vm0, %v28_v11 }
  0x2b   :  { %270 = vmatpush3.xpose.msk.msra.mxu0 %vm39_vm0, %v28_v11 }
  0x2c   :  { %271 = vmatprep.subr.msk.mxu0 %vm39_vm0, %v27_v12 }
  0x2f   :  { %272 = vmatpush3.xpose.msk.msra.mxu0 %vm39_vm0, %v27_v12 }
  0x30   :  { %273 = vmatprep.subr.msk.mxu0 %vm39_vm0, %v26_v13 }
  0x33   :  { %274 = vmatpush3.xpose.msk.msra.mxu0 %vm39_vm0, %v26_v13 }
  0x34   :  { %275 = vmatprep.subr.msk.mxu0 %vm39_vm0, %v25_v14 }
  0x37   :  { %276 = vmatpush3.xpose.msk.msra.mxu0 %vm39_vm0, %v25_v14 }
  0x38   :  { %277 = vmatprep.subr.msk.mxu0 %vm39_vm0, %v24_v15 }
  0x3b   :  { %278 = vmatpush3.xpose.msk.msra.mxu0 %vm39_vm0, %v24_v15 }
  0x3c   :  { %279 = vmatprep.subr.msk.mxu0 %vm39_vm0, %v23_v16 }
  0x3f   :  { %280 = vmatpush3.xpose.msk.msra.mxu0 %vm39_vm0, %v23_v16 }
  0x42   :  { %282 = vmatmul.mubr.msk.f32.vlgmr.msra.gmra.mxu0 %vm39_vm0, %v22_v17 }
 0x102   :  { %v283_v22 = vpop.f32.mrf.mxu0 }
 0x103   :  { %v181_v23 = vmul.f32 %v283_v22, %v229_v19 }
 0x104   :  { %v160_v26 = vpop.f32.mrf.mxu0 }
 0x105   :  { %v183_v27 = vadd.f32 %v181_v23, %v172_v21  ;;  %v180_v28 = vmul.f32 %v229_v19, %v160_v26 }
 0x107   :  { %v192_v29 = vadd.f32 %v230_v25, %v183_v27  ;;  %v182_v30 = vadd.f32 %v180_v28, %v171_v24 }
 0x109   :  { %194 = vst [vmem:[#allocation2 + $0x8] sm:$0xff] %v192_v29  ;;  %v191_v31 = vadd.f32 %v230_v25, %v182_v30 }
 0x10b   :  { %193 = vst [vmem:[#allocation2] sm:$0xff] %v191_v31 }
 0x10c   :  { %298 = shalt.err (!%p295_p4)
}
 0x10d   :  { %s310_s3 = smov 128   ;;  %s311_s4 = smov 8  }
 0x10e   :  { %206 = dma.vmem_to_hbm [thread:$0]  %s201_s11, 256, %s450_s5, [#allocation3], %s310_s3, %s310_s3, %s311_s4  }
 0x10f   :  { %307 = dma.done.wait [#allocation3], 256  }
 0x110   :  { %308 = vsyncadd [#allocation3], 4294967040 }
 0x111   :  { %210 = vsyncpa [#allocation3], 1 }

</bundles_post_ra>
